<compile_context>
chip_gen: v5e
topology: v5e:2x2
jax: 0.10.0
libtpu: 0.0.40
codegen_flags: <defaults>
</compile_context>

<pallas_src>
import functools

import numpy as np

import jax
import jax.numpy as jnp
from jax.experimental import pallas as pl
from jax.experimental.pallas import tpu as pltpu

BN_EPS = 1e-5


def _round_up(x, m):
    return ((x + m - 1) // m) * m


def _cin_kernel(num_fields, E, sizes_p, *refs):
    """Fused CIN forward for one tile of `tb` examples (tm = tb*E rows).

    refs = (x0t_ref,
            [w_ref, scale_ref, shift_ref] * num_layers,
            fc_w_ref, fc_b_ref,
            out_ref)
    All activations are (channels, rows): rows (b, e) live on lanes.
    """
    num_layers = len(sizes_p) - 1
    x0t_ref = refs[0]
    layer_refs = refs[1:1 + 3 * num_layers]
    fcw_ref = refs[1 + 3 * num_layers]
    fcb_ref = refs[2 + 3 * num_layers]
    out_ref = refs[3 + 3 * num_layers]

    tm = x0t_ref.shape[1]
    tb, out_size = out_ref.shape

    # x0 tile arrives in bf16 (halves HBM traffic); elementwise math stays f32.
    x0p = x0t_ref[...].astype(jnp.float32)                  # (s0p, tm), zero-padded rows
    x0 = x0p[:num_fields] if num_fields < sizes_p[0] else x0p
    hidden = x0p                                            # hidden_0 = x0 (padded)

    # Per-example sum over E as a matmul with a 0/1 selection matrix:
    # esum[m, b] = 1 if row m belongs to local example b.
    row = jax.lax.broadcasted_iota(jnp.int32, (tm, tb), 0)
    col = jax.lax.broadcasted_iota(jnp.int32, (tm, tb), 1)
    esum = ((row >= col * E) & (row < (col + 1) * E)).astype(jnp.float32)

    acc = jnp.zeros((out_size, tb), jnp.float32)            # running fc output (O, tb)
    col_off = 0
    for i in range(num_layers):
        w_ref, sc_ref, sh_ref = layer_refs[3 * i: 3 * i + 3]
        s_ip = sizes_p[i]
        s_jp = sizes_p[i + 1]

        # Cross features: (N, s_ip, tm) broadcast product, tile-aligned collapse
        # to (N*s_ip, tm) since s_ip % 8 == 0.  One MXU matmul per layer.
        cross = (x0[:, None, :] * hidden[None, :, :]).reshape(num_fields * s_ip, tm)
        z = jnp.dot(w_ref[...], cross.astype(jnp.bfloat16),
                    preferred_element_type=jnp.float32)      # (2*s_jp, tm)

        # Folded conv-bias + eval-mode BatchNorm, then ReLU (padded channels
        # have scale=shift=0, so they stay exactly zero).
        z = jnp.maximum(z * sc_ref[...] + sh_ref[...], 0.0)

        direct = z[:s_jp, :]                                 # torch.chunk(...)[0]
        hidden = z[s_jp:, :]                                 # torch.chunk(...)[1]

        # Epilogue accumulation: sum over E, then this layer's fc slice.
        d = jnp.dot(direct, esum, preferred_element_type=jnp.float32)   # (s_jp, tb)
        acc = acc + jnp.dot(fcw_ref[:, col_off:col_off + s_jp], d,
                            preferred_element_type=jnp.float32)         # (O, tb)
        col_off += s_jp

    out_ref[...] = (acc + fcb_ref[...]).T.astype(out_ref.dtype)          # (tb, O)


def _pick_examples_per_tile(B, E, row_limit):
    """Largest tb | B whose tile is layout-legal and fits the row budget."""
    divs = [d for d in range(1, B + 1) if B % d == 0]
    # Legal as BlockSpec tiles: either the whole batch, or 8-aligned example
    # count with a 128-aligned lane width (tb * E rows on lanes).
    legal = [d for d in divs if d == B or (d % 8 == 0 and (d * E) % 128 == 0)]
    within = [d for d in legal if d * E <= row_limit]
    if within:
        return max(within)
    # TODO(synk): no layout-legal tile fits the VMEM budget (odd B/E); fall
    # back to the smallest legal tile, which may exceed the budget.
    return min(legal)


def cin_forward(emb, params, *, num_fields, layer_sizes, output_size,
                max_rows_per_tile=2048, vmem_budget_bytes=20 * 1024 * 1024):
    """emb: (B, N, E) float32 -> (B, output_size) float32."""
    B, N, E = emb.shape
    assert N == num_fields
    sizes = [num_fields] + list(layer_sizes)
    sizes_p = [_round_up(s, 8) for s in sizes]
    num_layers = len(layer_sizes)

    # ---- weight prep: fold conv bias into BN shift, pad channel groups to 8 ----
    layer_inputs = []
    weight_bytes = 0
    for i, (s_i, s_j) in enumerate(zip(sizes[:-1], sizes[1:])):
        s_ip, s_jp = sizes_p[i], sizes_p[i + 1]
        out_c = 2 * s_j                            # is_direct=False -> 2*s_j channels
        w = params[f"conv_w_{i}"].reshape(out_c, num_fields, s_i)   # [o, k, h]
        w = jnp.pad(w, ((0, 0), (0, 0), (0, s_ip - s_i)))
        w_d = jnp.pad(w[:s_j], ((0, s_jp - s_j), (0, 0), (0, 0)))
        w_h = jnp.pad(w[s_j:], ((0, s_jp - s_j), (0, 0), (0, 0)))
        w_p = jnp.concatenate([w_d, w_h], axis=0).reshape(2 * s_jp, num_fields * s_ip)

        inv = 1.0 / jnp.sqrt(params[f"bn_var_{i}"] + BN_EPS)
        scale = params[f"bn_gamma_{i}"] * inv
        shift = params[f"bn_beta_{i}"] + (params[f"conv_b_{i}"] - params[f"bn_mean_{i}"]) * scale

        def _pad_halves(v, s_j=s_j, s_jp=s_jp):
            return jnp.concatenate([jnp.pad(v[:s_j], (0, s_jp - s_j)),
                                    jnp.pad(v[s_j:], (0, s_jp - s_j))]).reshape(2 * s_jp, 1)

        layer_inputs += [w_p.astype(jnp.bfloat16),
                         _pad_halves(scale).astype(jnp.float32),
                         _pad_halves(shift).astype(jnp.float32)]
        weight_bytes += 2 * s_jp * num_fields * s_ip * 2 + 2 * (2 * s_jp) * 4

    # fc weights, columns zero-padded to the padded direct sizes.
    fcw_cols = []
    off = 0
    for i, s_j in enumerate(layer_sizes):
        s_jp = sizes_p[i + 1]
        fcw_cols.append(jnp.pad(params["fc_w"][:, off:off + s_j],
                                ((0, 0), (0, s_jp - s_j))))
        off += s_j
    fc_w_p = jnp.concatenate(fcw_cols, axis=1).astype(jnp.float32)   # (O, sum(s_jp))
    fc_b_p = params["fc_b"].reshape(output_size, 1).astype(jnp.float32)
    weight_bytes += fc_w_p.size * 4 + output_size * 4

    # ---- x0 in rows-on-lanes layout, bf16, zero-padded to sizes_p[0] rows ----
    # TODO(synk): this wrapper transpose costs one extra HBM pass over the
    # embeddings; folding it into the tile DMA would need an unaligned
    # sublane->lane relayout inside the kernel, not done here.
    x0t = jnp.transpose(emb, (1, 0, 2)).reshape(num_fields, B * E)
    if sizes_p[0] > num_fields:
        x0t = jnp.pad(x0t, ((0, sizes_p[0] - num_fields), (0, 0)))
    x0t = x0t.astype(jnp.bfloat16)

    # ---- tile-size selection from a VMEM budget (conservative across gens) ----
    max_cross = max(num_fields * sizes_p[i] for i in range(num_layers))
    max_z = max(2 * sizes_p[i + 1] for i in range(num_layers))
    bytes_per_row = (2 * 2 * sizes_p[0]        # bf16 x0 tile, double-buffered
                     + 4 * sizes_p[0]          # f32 x0 / hidden_0
                     + 4 * max(sizes_p)        # running hidden
                     + 6 * max_cross           # cross features (f32 + bf16 copy)
                     + 4 * max_z               # conv/BN/ReLU output
                     + 64)                     # esum / d / acc slack
    avail = max(vmem_budget_bytes - 2 * weight_bytes, vmem_budget_bytes // 4)
    row_limit = max(E, min(max_rows_per_tile, avail // bytes_per_row))
    tb = _pick_examples_per_tile(B, E, row_limit)
    tm = tb * E
    grid = (B // tb,)

    inputs = [x0t] + layer_inputs + [fc_w_p, fc_b_p]
    in_specs = [pl.BlockSpec((sizes_p[0], tm), lambda i: (0, i))]
    in_specs += [pl.BlockSpec(a.shape, lambda i: (0, 0)) for a in inputs[1:]]
    out_specs = pl.BlockSpec((tb, output_size), lambda i: (i, 0))

    vmem_limit = int(min(112 * 2**20,
                         max(48 * 2**20, 2 * vmem_budget_bytes + 4 * weight_bytes)))

    kernel = functools.partial(_cin_kernel, num_fields, E, tuple(sizes_p))
    return pl.pallas_call(
        kernel,
        out_shape=jax.ShapeDtypeStruct((B, output_size), jnp.float32),
        grid=grid,
        in_specs=in_specs,
        out_specs=out_specs,
        compiler_params=pltpu.CompilerParams(
            dimension_semantics=("parallel",),
            vmem_limit_bytes=vmem_limit),
    )(*inputs)


def cin_reference(emb, params, *, num_fields, layer_sizes, output_size):
    """Pure-JAX f32 mirror of the PyTorch forward (eval-mode BN)."""
    B, N, E = emb.shape
    sizes = [num_fields] + list(layer_sizes)
    x0 = jnp.transpose(emb, (0, 2, 1))            # (B, E, N)
    hidden = x0
    directs = []
    for i, (s_i, s_j) in enumerate(zip(sizes[:-1], sizes[1:])):
        prod = jnp.einsum("ben,beh->benh", x0, hidden).reshape(B, E, N * s_i)
        z = jnp.einsum("bec,oc->beo", prod, params[f"conv_w_{i}"]) + params[f"conv_b_{i}"]
        z = ((z - params[f"bn_mean_{i}"]) / jnp.sqrt(params[f"bn_var_{i}"] + BN_EPS)
             * params[f"bn_gamma_{i}"] + params[f"bn_beta_{i}"])
        z = jax.nn.relu(z)
        directs.append(z[..., :s_j])
        hidden = z[..., s_j:]
    d = jnp.sum(jnp.concatenate(directs, axis=-1), axis=1)   # (B, sum(layer_sizes))
    return d @ params["fc_w"].T + params["fc_b"]


def init_params(key, embed_size, num_fields, layer_sizes, output_size):
    sizes = [num_fields] + list(layer_sizes)
    params = {}
    for i, (s_i, s_j) in enumerate(zip(sizes[:-1], sizes[1:])):
        in_c = num_fields * s_i
        out_c = 2 * s_j
        key, kw, kb, kg, kbt, km, kv = jax.random.split(key, 7)
        params[f"conv_w_{i}"] = 0.1 * jax.random.normal(kw, (out_c, in_c), jnp.float32)
        params[f"conv_b_{i}"] = 0.1 * jax.random.normal(kb, (out_c,), jnp.float32)
        params[f"bn_gamma_{i}"] = 1.0 + 0.1 * jax.random.normal(kg, (out_c,), jnp.float32)
        params[f"bn_beta_{i}"] = 0.1 * jax.random.normal(kbt, (out_c,), jnp.float32)
        params[f"bn_mean_{i}"] = 0.1 * jax.random.normal(km, (out_c,), jnp.float32)
        params[f"bn_var_{i}"] = 1.0 + 0.1 * jax.random.uniform(kv, (out_c,), jnp.float32)
    S = int(sum(layer_sizes))
    key, kw, kb = jax.random.split(key, 3)
    params["fc_w"] = 0.1 * jax.random.normal(kw, (output_size, S), jnp.float32)
    params["fc_b"] = 0.1 * jax.random.normal(kb, (output_size,), jnp.float32)
    return params


def _run_case(B, num_fields, embed_size, layer_sizes, output_size, seed, **kw):
    key = jax.random.PRNGKey(seed)
    k_emb, k_par = jax.random.split(key)
    emb = jax.random.normal(k_emb, (B, num_fields, embed_size), jnp.float32)
    params = init_params(k_par, embed_size, num_fields, layer_sizes, output_size)

    out = cin_forward(emb, params, num_fields=num_fields,
                      layer_sizes=layer_sizes, output_size=output_size, **kw)
    out = jax.block_until_ready(out)

    ref = cin_reference(emb, params, num_fields=num_fields,
                        layer_sizes=layer_sizes, output_size=output_size)
    assert out.shape == (B, output_size)
    # bf16 matmul operands -> relaxed tolerance vs the pure-f32 reference.
    np.testing.assert_allclose(np.asarray(out), np.asarray(ref), rtol=3e-2, atol=3e-2)


if __name__ == "__main__":
    # Primary small config (single-tile grid).
    _run_case(B=2, num_fields=4, embed_size=16, layer_sizes=[4, 4],
              output_size=8, seed=0)
    # Exercise the multi-tile pipelined/parallel grid path and unaligned
    # channel counts (forces 2 tiles of 8 examples each).
    _run_case(B=16, num_fields=6, embed_size=16, layer_sizes=[5, 7],
              output_size=3, seed=1, max_rows_per_tile=128)
    print("KERNEL_OK")
</pallas_src>

<mosaic_0001>
module attributes {stable_mosaic.version = 11 : i64} {
  func.func @_cin_kernel(%arg0: i32, %arg1: memref<8x32xbf16, #tpu.memory_space<vmem>>, %arg2: memref<16x32xbf16, #tpu.memory_space<vmem>>, %arg3: memref<16x1xf32, #tpu.memory_space<vmem>>, %arg4: memref<16x1xf32, #tpu.memory_space<vmem>>, %arg5: memref<16x32xbf16, #tpu.memory_space<vmem>>, %arg6: memref<16x1xf32, #tpu.memory_space<vmem>>, %arg7: memref<16x1xf32, #tpu.memory_space<vmem>>, %arg8: memref<8x16xf32, #tpu.memory_space<vmem>>, %arg9: memref<8x1xf32, #tpu.memory_space<vmem>>, %arg10: memref<2x8xf32, #tpu.memory_space<vmem>>) attributes {dimension_semantics = [#tpu.dimension_semantics<parallel>], iteration_bounds = array<i64: 1>, scalar_prefetch = 0 : i64, scratch_operands = 0 : i64, tpu.core_type = #tpu.core_type<tc>, window_params = [{transform_indices = @transform_0, window_bounds = array<i64: 8, 32>}, {pipeline_mode = #tpu.pipeline_mode<synchronous>, transform_indices = @transform_1, window_bounds = array<i64: 16, 32>}, {pipeline_mode = #tpu.pipeline_mode<synchronous>, transform_indices = @transform_2, window_bounds = array<i64: 16, 1>}, {pipeline_mode = #tpu.pipeline_mode<synchronous>, transform_indices = @transform_3, window_bounds = array<i64: 16, 1>}, {pipeline_mode = #tpu.pipeline_mode<synchronous>, transform_indices = @transform_4, window_bounds = array<i64: 16, 32>}, {pipeline_mode = #tpu.pipeline_mode<synchronous>, transform_indices = @transform_5, window_bounds = array<i64: 16, 1>}, {pipeline_mode = #tpu.pipeline_mode<synchronous>, transform_indices = @transform_6, window_bounds = array<i64: 16, 1>}, {pipeline_mode = #tpu.pipeline_mode<synchronous>, transform_indices = @transform_7, window_bounds = array<i64: 8, 16>}, {pipeline_mode = #tpu.pipeline_mode<synchronous>, transform_indices = @transform_8, window_bounds = array<i64: 8, 1>}, {transform_indices = @transform_9, window_bounds = array<i64: 2, 8>}]} {
    %c0 = arith.constant 0 : index
    %c0_0 = arith.constant 0 : index
    %0 = vector.load %arg1[%c0, %c0_0] : memref<8x32xbf16, #tpu.memory_space<vmem>>, vector<8x32xbf16>
    %1 = arith.extf %0 : vector<8x32xbf16> to vector<8x32xf32>
    %2 = vector.extract_strided_slice %1 {offsets = [0, 0], sizes = [4, 32], strides = [1, 1]} : vector<8x32xf32> to vector<4x32xf32>
    %3 = tpu.iota {dimensions = array<i32: 0>} : vector<32x2xi32>
    %4 = tpu.iota {dimensions = array<i32: 1>} : vector<32x2xi32>
    %c16_i32 = arith.constant 16 : i32
    %5 = vector.broadcast %c16_i32 : i32 to vector<32x2xi32>
    %6 = arith.muli %4, %5 : vector<32x2xi32>
    %7 = arith.cmpi sge, %3, %6 : vector<32x2xi32>
    %c1_i32 = arith.constant 1 : i32
    %8 = vector.broadcast %c1_i32 : i32 to vector<32x2xi32>
    %9 = arith.addi %4, %8 : vector<32x2xi32>
    %c16_i32_1 = arith.constant 16 : i32
    %10 = vector.broadcast %c16_i32_1 : i32 to vector<32x2xi32>
    %11 = arith.muli %9, %10 : vector<32x2xi32>
    %12 = arith.cmpi slt, %3, %11 : vector<32x2xi32>
    %13 = arith.andi %7, %12 : vector<32x2xi1>
    %14 = arith.extui %13 : vector<32x2xi1> to vector<32x2xi32>
    %15 = arith.sitofp %14 : vector<32x2xi32> to vector<32x2xf32>
    %cst = arith.constant 0.000000e+00 : f32
    %16 = vector.broadcast %cst : f32 to vector<8x2xf32>
    %17 = vector.shape_cast %2 : vector<4x32xf32> to vector<4x1x32xf32>
    %18 = vector.shape_cast %1 : vector<8x32xf32> to vector<1x8x32xf32>
    %19 = vector.broadcast %17 : vector<4x1x32xf32> to vector<4x8x32xf32>
    %20 = vector.broadcast %18 : vector<1x8x32xf32> to vector<4x8x32xf32>
    %21 = arith.mulf %19, %20 : vector<4x8x32xf32>
    %22 = vector.shape_cast %21 : vector<4x8x32xf32> to vector<32x32xf32>
    %c0_2 = arith.constant 0 : index
    %c0_3 = arith.constant 0 : index
    %23 = vector.load %arg2[%c0_2, %c0_3] : memref<16x32xbf16, #tpu.memory_space<vmem>>, vector<16x32xbf16>
    %24 = arith.truncf %22 : vector<32x32xf32> to vector<32x32xbf16>
    %cst_4 = arith.constant dense<0.000000e+00> : vector<16x32xf32>
    %25 = tpu.matmul %23, %24, %cst_4 {dimension_numbers = #tpu.dot_dimension_numbers<[1], [0], [0], [1], [0, 0, 1, 1], [], []>} : vector<16x32xbf16>, vector<32x32xbf16>, vector<16x32xf32> -> vector<16x32xf32>
    %c0_5 = arith.constant 0 : index
    %c0_6 = arith.constant 0 : index
    %26 = vector.load %arg3[%c0_5, %c0_6] : memref<16x1xf32, #tpu.memory_space<vmem>>, vector<16x1xf32>
    %27 = vector.broadcast %26 : vector<16x1xf32> to vector<16x32xf32>
    %28 = arith.mulf %25, %27 : vector<16x32xf32>
    %c0_7 = arith.constant 0 : index
    %c0_8 = arith.constant 0 : index
    %29 = vector.load %arg4[%c0_7, %c0_8] : memref<16x1xf32, #tpu.memory_space<vmem>>, vector<16x1xf32>
    %30 = vector.broadcast %29 : vector<16x1xf32> to vector<16x32xf32>
    %31 = arith.addf %28, %30 : vector<16x32xf32>
    %cst_9 = arith.constant 0.000000e+00 : f32
    %32 = vector.broadcast %cst_9 : f32 to vector<16x32xf32>
    %33 = arith.maximumf %31, %32 : vector<16x32xf32>
    %34 = vector.extract_strided_slice %33 {offsets = [0, 0], sizes = [8, 32], strides = [1, 1]} : vector<16x32xf32> to vector<8x32xf32>
    %35 = vector.extract_strided_slice %33 {offsets = [8, 0], sizes = [8, 32], strides = [1, 1]} : vector<16x32xf32> to vector<8x32xf32>
    %cst_10 = arith.constant dense<0.000000e+00> : vector<8x2xf32>
    %36 = tpu.matmul %34, %15, %cst_10 {dimension_numbers = #tpu.dot_dimension_numbers<[1], [0], [0], [1], [0, 0, 1, 1], [], []>} : vector<8x32xf32>, vector<32x2xf32>, vector<8x2xf32> -> vector<8x2xf32>
    %c0_11 = arith.constant 0 : index
    %c0_12 = arith.constant 0 : index
    %37 = vector.load %arg8[%c0_11, %c0_12] : memref<8x16xf32, #tpu.memory_space<vmem>>, vector<8x8xf32>
    %cst_13 = arith.constant dense<0.000000e+00> : vector<8x2xf32>
    %38 = tpu.matmul %37, %36, %cst_13 {dimension_numbers = #tpu.dot_dimension_numbers<[1], [0], [0], [1], [0, 0, 1, 1], [], []>} : vector<8x8xf32>, vector<8x2xf32>, vector<8x2xf32> -> vector<8x2xf32>
    %39 = arith.addf %16, %38 : vector<8x2xf32>
    %40 = vector.shape_cast %2 : vector<4x32xf32> to vector<4x1x32xf32>
    %41 = vector.shape_cast %35 : vector<8x32xf32> to vector<1x8x32xf32>
    %42 = vector.broadcast %40 : vector<4x1x32xf32> to vector<4x8x32xf32>
    %43 = vector.broadcast %41 : vector<1x8x32xf32> to vector<4x8x32xf32>
    %44 = arith.mulf %42, %43 : vector<4x8x32xf32>
    %45 = vector.shape_cast %44 : vector<4x8x32xf32> to vector<32x32xf32>
    %c0_14 = arith.constant 0 : index
    %c0_15 = arith.constant 0 : index
    %46 = vector.load %arg5[%c0_14, %c0_15] : memref<16x32xbf16, #tpu.memory_space<vmem>>, vector<16x32xbf16>
    %47 = arith.truncf %45 : vector<32x32xf32> to vector<32x32xbf16>
    %cst_16 = arith.constant dense<0.000000e+00> : vector<16x32xf32>
    %48 = tpu.matmul %46, %47, %cst_16 {dimension_numbers = #tpu.dot_dimension_numbers<[1], [0], [0], [1], [0, 0, 1, 1], [], []>} : vector<16x32xbf16>, vector<32x32xbf16>, vector<16x32xf32> -> vector<16x32xf32>
    %c0_17 = arith.constant 0 : index
    %c0_18 = arith.constant 0 : index
    %49 = vector.load %arg6[%c0_17, %c0_18] : memref<16x1xf32, #tpu.memory_space<vmem>>, vector<16x1xf32>
    %50 = vector.broadcast %49 : vector<16x1xf32> to vector<16x32xf32>
    %51 = arith.mulf %48, %50 : vector<16x32xf32>
    %c0_19 = arith.constant 0 : index
    %c0_20 = arith.constant 0 : index
    %52 = vector.load %arg7[%c0_19, %c0_20] : memref<16x1xf32, #tpu.memory_space<vmem>>, vector<16x1xf32>
    %53 = vector.broadcast %52 : vector<16x1xf32> to vector<16x32xf32>
    %54 = arith.addf %51, %53 : vector<16x32xf32>
    %cst_21 = arith.constant 0.000000e+00 : f32
    %55 = vector.broadcast %cst_21 : f32 to vector<16x32xf32>
    %56 = arith.maximumf %54, %55 : vector<16x32xf32>
    %57 = vector.extract_strided_slice %56 {offsets = [0, 0], sizes = [8, 32], strides = [1, 1]} : vector<16x32xf32> to vector<8x32xf32>
    %cst_22 = arith.constant dense<0.000000e+00> : vector<8x2xf32>
    %58 = tpu.matmul %57, %15, %cst_22 {dimension_numbers = #tpu.dot_dimension_numbers<[1], [0], [0], [1], [0, 0, 1, 1], [], []>} : vector<8x32xf32>, vector<32x2xf32>, vector<8x2xf32> -> vector<8x2xf32>
    %c0_23 = arith.constant 0 : index
    %c8 = arith.constant 8 : index
    %59 = vector.load %arg8[%c0_23, %c8] : memref<8x16xf32, #tpu.memory_space<vmem>>, vector<8x8xf32>
    %cst_24 = arith.constant dense<0.000000e+00> : vector<8x2xf32>
    %60 = tpu.matmul %59, %58, %cst_24 {dimension_numbers = #tpu.dot_dimension_numbers<[1], [0], [0], [1], [0, 0, 1, 1], [], []>} : vector<8x8xf32>, vector<8x2xf32>, vector<8x2xf32> -> vector<8x2xf32>
    %61 = arith.addf %39, %60 : vector<8x2xf32>
    %c0_25 = arith.constant 0 : index
    %c0_26 = arith.constant 0 : index
    %62 = vector.load %arg9[%c0_25, %c0_26] : memref<8x1xf32, #tpu.memory_space<vmem>>, vector<8x1xf32>
    %63 = vector.broadcast %62 : vector<8x1xf32> to vector<8x2xf32>
    %64 = arith.addf %61, %63 : vector<8x2xf32>
    %65 = tpu.transpose %64, [1, 0] : vector<8x2xf32> -> vector<2x8xf32>
    %c0_27 = arith.constant 0 : index
    %c0_28 = arith.constant 0 : index
    %66 = vector.load %arg10[%c0_27, %c0_28] : memref<2x8xf32, #tpu.memory_space<vmem>>, vector<2x8xf32>
    tpu.vector_store %arg10[%c0_27, %c0_28], %65 {strides = array<i32>} : memref<2x8xf32, #tpu.memory_space<vmem>>, vector<2x8xf32>,
    return
  }
  func.func @transform_0(%arg0: i32) -> (i32, i32) {
    %c0_i32 = arith.constant 0 : i32
    %c0_i32_0 = arith.constant 0 : i32
    return %c0_i32, %arg0 : i32, i32
  }
  func.func @transform_1(%arg0: i32) -> (i32, i32) {
    %c0_i32 = arith.constant 0 : i32
    %c0_i32_0 = arith.constant 0 : i32
    %c0_i32_1 = arith.constant 0 : i32
    return %c0_i32, %c0_i32_0 : i32, i32
  }
  func.func @transform_2(%arg0: i32) -> (i32, i32) {
    %c0_i32 = arith.constant 0 : i32
    %c0_i32_0 = arith.constant 0 : i32
    %c0_i32_1 = arith.constant 0 : i32
    return %c0_i32, %c0_i32_0 : i32, i32
  }
  func.func @transform_3(%arg0: i32) -> (i32, i32) {
    %c0_i32 = arith.constant 0 : i32
    %c0_i32_0 = arith.constant 0 : i32
    %c0_i32_1 = arith.constant 0 : i32
    return %c0_i32, %c0_i32_0 : i32, i32
  }
  func.func @transform_4(%arg0: i32) -> (i32, i32) {
    %c0_i32 = arith.constant 0 : i32
    %c0_i32_0 = arith.constant 0 : i32
    %c0_i32_1 = arith.constant 0 : i32
    return %c0_i32, %c0_i32_0 : i32, i32
  }
  func.func @transform_5(%arg0: i32) -> (i32, i32) {
    %c0_i32 = arith.constant 0 : i32
    %c0_i32_0 = arith.constant 0 : i32
    %c0_i32_1 = arith.constant 0 : i32
    return %c0_i32, %c0_i32_0 : i32, i32
  }
  func.func @transform_6(%arg0: i32) -> (i32, i32) {
    %c0_i32 = arith.constant 0 : i32
    %c0_i32_0 = arith.constant 0 : i32
    %c0_i32_1 = arith.constant 0 : i32
    return %c0_i32, %c0_i32_0 : i32, i32
  }
  func.func @transform_7(%arg0: i32) -> (i32, i32) {
    %c0_i32 = arith.constant 0 : i32
    %c0_i32_0 = arith.constant 0 : i32
    %c0_i32_1 = arith.constant 0 : i32
    return %c0_i32, %c0_i32_0 : i32, i32
  }
  func.func @transform_8(%arg0: i32) -> (i32, i32) {
    %c0_i32 = arith.constant 0 : i32
    %c0_i32_0 = arith.constant 0 : i32
    %c0_i32_1 = arith.constant 0 : i32
    return %c0_i32, %c0_i32_0 : i32, i32
  }
  func.func @transform_9(%arg0: i32) -> (i32, i32) {
    %c0_i32 = arith.constant 0 : i32
    %c0_i32_0 = arith.constant 0 : i32
    return %arg0, %c0_i32 : i32, i32
  }
}

</mosaic_0001>

<bundles_post_ra>
// kernel: tpu_custom_call.1
= control target key start
LH: loop header
LB: loop body
LE: loop exit
PB: predicated region body
PF: predicated region fallthrough
CT: control target
= control target key end

     0   :  { %v397_v3 = vmov 0   ;;  %s517_s0 = inlined_call_operand.vmem [shape: bf16[8,32], index: 0, kind: input, shape index: {}]   ;;  %s518_s1 = inlined_call_operand.vmem [shape: bf16[16,32], index: 1, kind: input, shape index: {}]   ;;  %s519_s2 = inlined_call_operand.vmem [shape: f32[16,1], index: 2, kind: input, shape index: {}]   ;;  %s520_s3 = inlined_call_operand.vmem [shape: f32[16,1], index: 3, kind: input, shape index: {}]   ;;  %s521_s4 = inlined_call_operand.vmem [shape: bf16[16,32], index: 4, kind: input, shape index: {}]   ;;  %s522_s5 = inlined_call_operand.vmem [shape: f32[16,1], index: 5, kind: input, shape index: {}]   ;;  %s523_s6 = inlined_call_operand.vmem [shape: f32[16,1], index: 6, kind: input, shape index: {}]   ;;  %s524_s7 = inlined_call_operand.vmem [shape: f32[8,16], index: 7, kind: input, shape index: {}]   ;;  %s525_s8 = inlined_call_operand.vmem [shape: f32[8,1], index: 8, kind: input, shape index: {}]   ;;  %s526_s9 = inlined_call_operand.hbm [shape: f32[2,8], index: 9, kind: output, shape index: {}]  }
   0x1   :  { %v34_v0 = vld [vmem:[%s517_s0] sm:$0xf]  ;;  %v110_v1 = vld [vmem:[%s519_s2 + $0x8] sm:$0xff]  ;;  %368 = vset.pattern.permute.xlu0 %v397_v3  ;;  %369 = vset.pattern.permute.xlu1 %v397_v3 }
   0x2   :  { %v457_v2 = vunpack.c.l.bf16 %v34_v0  ;;  %v109_v4 = vld [vmem:[%s519_s2] sm:$0xff]  ;;  %118 = vperm.xlu0 %368, %v110_v1  }
   0x3   :  { %v123_v5 = vld [vmem:[%s520_s3] sm:$0xff]  ;;  %113 = vperm.xlu1 %369, %v109_v4  }
   0x4   :  { %14 = vsyncpa [#allocation3], 0  ;;  %v68_v6 = vrot.slane %v457_v2, 2  ;;  %v69_v7 = vrot.slane %v457_v2, 3  ;;  %v67_v8 = vrot.slane %v457_v2, 1  ;;  %v70_v9 = vperm.slane %v457_v2, 0  ;;  %370 = vset.pattern.permute.xlu2 %v397_v3 }
   0x5   :  { %127 = vperm.xlu2 %370, %v123_v5   ;;  %v124_v17 = vld [vmem:[%s520_s3 + $0x8] sm:$0xff]  ;;  %v361_v20 = vld [vmem:[%s518_s1] sm:$0xff]  ;;  %vm91_vm0 = vcmask 261120   ;;  %v36_v21 = vlaneseq  ;;  %v398_v29 = vmov 1.0   ;;  %s399_s24 = smov 120   ;;  %vm233_vm13 = vcmask 64512  }
   0x6   :  { %v469_v10 = vperm.slane %v68_v6, 0  ;;  %v471_v11 = vperm.slane %v69_v7, 0  ;;  %v473_v12 = vperm.slane %v67_v8, 0  ;;  %v78_v15 = vmul.f32 %v70_v9, %v457_v2  ;;  %v192_v31 = vld [vmem:[%s522_s5] sm:$0xff]  ;;  %s326_s27 = sshll.u32 %s526_s9, 4  ;;  %s327_s27 = int_to_ptr.hbm [resolvable:$true] %s326_s27 }
   0x7   :  { %v42_v22 = vand.u32 127, %v36_v21  ;;  %v37_v23 = vshrl.u32 %v36_v21, 7  ;;  %v199_v32 = vld [vmem:[%s523_s6] sm:$0xff]  ;;  %vm317_vm14 = vcmask 58368  }
   0x8   :  { %v80_v13 = vmul.f32 %v469_v10, %v457_v2  ;;  %v81_v14 = vmul.f32 %v471_v11, %v457_v2  ;;  %v79_v16 = vmul.f32 %v473_v12, %v457_v2  ;;  %v278_v37 = vld [vmem:[%s525_s8] sm:$0xff] }
   0x9   :  { %v48_v24 = vadd.s32 1, %v42_v22  ;;  %v40_v25 = vadd.s32 24, %v37_v23  ;;  %v43_v26 = vmul.u32 16, %v42_v22  ;;  %v39_v28 = vadd.s32 16, %v37_v23  ;;  %v362_v52 = vld [vmem:[%s521_s4] sm:$0xff]  ;;  %s400_s4 = smov [#allocation2]  }
   0xa   :  { %v85_v18 = vpack.c.bf16 %v81_v14, %v80_v13  ;;  %132 = vperm.xlu0 %368, %v124_v17   ;;  %v84_v19 = vpack.c.bf16 %v79_v16, %v78_v15  ;;  %v38_v30 = vadd.s32 8, %v37_v23  ;;  %v162_v54 = vld [vmem:[%s524_s7] sm:$0xff]  ;;  %s324_s7 = sshll.u32 %s400_s4, 4  ;;  %s325_s7 = int_to_ptr.vmem [resolvable:$true] %s324_s7 }
   0xb   :  { %v49_v27 = vmul.u32 16, %v48_v24  ;;  %vm47_vm1 = vcmp.ge.s32.totalorder %v40_v25, %v43_v26  ;;  %vm46_vm4 = vcmp.ge.s32.totalorder %v39_v28, %v43_v26  ;;  %vm44_vm10 = vcmp.ge.s32.totalorder %v37_v23, %v43_v26  ;;  %195 = vperm.xlu1 %369, %v192_v31  }
   0xc   :  { %101 = vmatpush.bf16.msra.mxu0 %v85_v18  ;;  %vm45_vm7 = vcmp.ge.s32.totalorder %v38_v30, %v43_v26 }
   0xd   :  { %vm53_vm2 = vcmp.lt.s32.totalorder %v40_v25, %v49_v27  ;;  %vm52_vm5 = vcmp.lt.s32.totalorder %v39_v28, %v49_v27  ;;  %vm51_vm8 = vcmp.lt.s32.totalorder %v38_v30, %v49_v27  ;;  %vm50_vm11 = vcmp.lt.s32.totalorder %v37_v23, %v49_v27  ;;  %202 = vperm.xlu2 %370, %v199_v32  }
   0xe   :  { %vm57_vm3 = vmand %vm47_vm1, %vm53_vm2 }
   0xf   :  { %344 = vmatpush.msk.msra.mxu1 %vm57_vm3, %v398_v29  ;;  %354 = vmatpush.msk.msra.mxu3 %vm57_vm3, %v398_v29  ;;  %vm56_vm6 = vmand %vm46_vm4, %vm52_vm5 }
  0x10   :  { %102 = vmatpush.bf16.msra.mxu0 %v84_v19  ;;  %vm55_vm9 = vmand %vm45_vm7, %vm51_vm8 }
  0x11   :  { %345 = vmatpush.msk.msra.mxu1 %vm56_vm6, %v398_v29  ;;  %355 = vmatpush.msk.msra.mxu3 %vm56_vm6, %v398_v29  ;;  %vm54_vm12 = vmand %vm44_vm10, %vm50_vm11 }
  0x12   :  { %231 = vrot.lane.b32.xlu0 %v162_v54, %s399_s24 }
  0x13   :  { %343 = vmatmul.msk.bf16.vlgmr.msra.gmra.mxu0 %vm91_vm0, %v361_v20  ;;  %346 = vmatpush.msk.msra.mxu1 %vm55_vm9, %v398_v29 }
  0x14   :  { %356 = vmatpush.msk.msra.mxu3 %vm55_vm9, %v398_v29  ;;  %281 = vperm.xlu1 %369, %v278_v37  }
  0x15   :  { %347 = vmatpush.msk.msra.mxu1 %vm54_vm12, %v398_v29 }
  0x16   :  { %357 = vmatpush.msk.msra.mxu3 %vm54_vm12, %v398_v29 }
  0x5f   :  { %v128_v34 = vpop.permute.xlu2 %127 }
  0x67   :  { %v203_v58 = vpop.permute.xlu2 %202 }
  0x74   :  { %v119_v35 = vpop.permute.xlu0 %118 }
  0x75   :  { %v114_v33 = vpop.permute.xlu1 %113 }
  0x7c   :  { %v133_v43 = vpop.permute.xlu0 %132 }
  0x7d   :  { %v196_v55 = vpop.permute.xlu1 %195 }
  0x84   :  { %v232_v62 = vpop.permute.xlu0 %231 }
  0x86   :  { %v282_v3 = vpop.permute.xlu1 %281 }
  0x90   :  { %v104_v36 = vpop.f32.mrf.mxu0 }
  0x91   :  { %v121_v38 = vmul.f32 %v114_v33, %v104_v36 }
  0x93   :  { %v135_v39 = vadd.f32 %v128_v34, %v121_v38 }
  0x95   :  { %v137_v40 = vmax.f32 %v135_v39, 0.0 }
  0x97   :  { %348 = vmatmul.msk.f32.vlgmr.msra.gmra.mxu1 %vm91_vm0, %v137_v40 }
  0x98   :  { %v106_v41 = vpop.f32.mrf.mxu0 }
  0x99   :  { %v122_v42 = vmul.f32 %v119_v35, %v106_v41 }
  0x9b   :  { %v136_v44 = vadd.f32 %v133_v43, %v122_v42 }
  0x9d   :  { %v138_v45 = vmax.f32 %v136_v44, 0.0 }
  0x9f   :  { %v165_v46 = vmul.f32 %v138_v45, %v469_v10  ;;  %v166_v47 = vmul.f32 %v138_v45, %v471_v11  ;;  %v163_v49 = vmul.f32 %v138_v45, %v70_v9  ;;  %v164_v50 = vmul.f32 %v138_v45, %v473_v12 }
  0xa1   :  { %v170_v48 = vpack.c.bf16 %v166_v47, %v165_v46  ;;  %v169_v51 = vpack.c.bf16 %v164_v50, %v163_v49 }
  0xa3   :  { %185 = vmatpush.bf16.msra.mxu2 %v170_v48 }
  0xa7   :  { %186 = vmatpush.bf16.msra.mxu2 %v169_v51 }
  0xaa   :  { %353 = vmatmul.msk.bf16.vlgmr.msra.gmra.mxu2 %vm91_vm0, %v362_v52 }
 0x114   :  { %v159_v53 = vpop.f32.mrf.mxu1 }
 0x115   :  { %273 = vmatpush.msrb.mxu3 %v159_v53 }
 0x12d   :  { %v188_v56 = vpop.f32.mrf.mxu2 }
 0x12e   :  { %v198_v57 = vmul.f32 %v196_v55, %v188_v56 }
 0x130   :  { %v205_v59 = vadd.f32 %v203_v58, %v198_v57 }
 0x132   :  { %v206_v60 = vmax.f32 %v205_v59, 0.0 }
 0x134   :  { %358 = vmatmul.msk.f32.vlgmr.msra.gmra.mxu3 %vm91_vm0, %v206_v60 }
 0x135   :  { %v190_v61 = vpop.f32.mrf.mxu2 }
 0x13c   :  { %360 = vmatmul.msk.f32.vlgmr.msrb.gmra.mxu3 %vm233_vm13, %v162_v54 }
 0x1b7   :  { %v227_v63 = vpop.f32.mrf.mxu3 }
 0x1b8   :  { %251 = vmatpush.msrb.mxu1 %v227_v63 }
 0x1b9   :  { %359 = vmatmul.msk.f32.vlgmr.msrb.gmra.mxu1 %vm233_vm13, %v232_v62 }
 0x1bf   :  { %v275_v0 = vpop.f32.mrf.mxu3 }
 0x236   :  { %v253_v1 = vpop.f32.mrf.mxu1 }
 0x237   :  { %v276_v2 = vadd.f32 %v275_v0, %v253_v1 }
 0x239   :  { %v284_v4 = vadd.f32 %v282_v3, %v276_v2 }
 0x23b   :  { %285 = vxpose.xlu2.b32.start.end [1/1] (short) (narrow) %v284_v4, 8 }
 0x2d4   :  { %v301_v5 = vpop.trf.xlu2 }
 0x2d5   :  { %318 = vst.msk [vmem:[#allocation2] sm:$0x3] %vm317_vm14, %v301_v5 }
 0x2d6   :  { %329 = dma.vmem_to_hbm [thread:$0]  %s325_s7, 32, %s327_s27, [#allocation3]  }
 0x2d7   :  { %395 = dma.done.wait [#allocation3], 32  }
 0x2d8   :  { %396 = vsyncadd [#allocation3], 4294967264 }
 0x2d9   :  { %334 = vsyncpa [#allocation3], 1 }

</bundles_post_ra>
